<compile_context>
chip_gen: v5e
topology: v5e:2x2
jax: 0.10.0
libtpu: 0.0.40
codegen_flags: <defaults>
</compile_context>

<pallas_src>
import functools

import jax
import jax.numpy as jnp
from jax.experimental import pallas as pl
from jax.experimental.pallas import tpu as pltpu

LANES = 128        # TPU lane width
SUBLANES = 8       # TPU sublane count (f32)
TILE_ROWS = 4096   # (4096, 128) f32 = 2 MiB per input per buffer
SMOOTH = 1e-06


def _default_num_splits():
    """2 on chips with two TensorCores per device (v4/v5p/v7x), else 1."""
    try:
        kind = jax.devices()[0].device_kind.lower()
    except Exception:
        return 1
    if any(tag in kind for tag in ("v4", "v5p", "7x", "v7")):
        return 2
    return 1   # v5e / v6e: a parallel split is pure overhead on a single TC


def _tile_partial_slabs(x, y, mask):
    """Per-tile partial sums folded to (8, LANES) slabs: (bce, probs*y, probs+y)."""
    e = jnp.exp(-jnp.abs(x))                          # shared by BCE and sigmoid
    bce = jnp.maximum(x, 0.0) - x * y + jnp.log1p(e)
    r = 1.0 / (1.0 + e)
    probs = jnp.where(x >= 0.0, r, e * r)             # == sigmoid(x), one exp total
    inter = probs * y
    denom = probs + y                                 # Dice only ever needs the sum
    if mask is not None:
        # jnp.where (not multiply) so NaN/Inf garbage in padded rows can't leak.
        bce = jnp.where(mask, bce, 0.0)
        inter = jnp.where(mask, inter, 0.0)
        denom = jnp.where(mask, denom, 0.0)
    rows, cols = x.shape
    fold = (rows // SUBLANES, SUBLANES, cols)         # follows the native (8,128) tiling
    return (jnp.sum(bce.reshape(fold), axis=0),
            jnp.sum(inter.reshape(fold), axis=0),
            jnp.sum(denom.reshape(fold), axis=0))


def _partial_sums_kernel(x_ref, y_ref, out_ref, *, n_valid, num_tiles,
                         tiles_per_split, tile_elems, has_ragged, has_overhang):
    c = pl.program_id(0)               # parallel split index
    t = pl.program_id(1)               # reduction step within the split
    g = c * tiles_per_split + t        # logical (unclamped) global tile index

    @pl.when(t == 0)
    def _():
        out_ref[...] = jnp.zeros_like(out_ref)

    x = x_ref[...].astype(jnp.float32)
    y = y_ref[...].astype(jnp.float32)

    def accumulate(mask):
        bce, inter, denom = _tile_partial_slabs(x, y, mask)
        out_ref[0, 0, :, :] += bce
        out_ref[0, 1, :, :] += inter
        out_ref[0, 2, :, :] += denom

    if has_ragged:
        if num_tiles > 1:
            @pl.when(g < num_tiles - 1)
            def _():                   # steady state: every element valid, no mask work
                accumulate(None)

        @pl.when(g == num_tiles - 1)
        def _():                       # the single ragged real tile
            rows, cols = x.shape
            local = (jax.lax.broadcasted_iota(jnp.int32, (rows, cols), 0) * cols
                     + jax.lax.broadcasted_iota(jnp.int32, (rows, cols), 1))
            # Static Python int: no per-element global-index math and no int32
            # overflow even for >2**31-element tensors.
            remaining = n_valid - (num_tiles - 1) * tile_elems
            accumulate(local < remaining)
        # g >= num_tiles (clamped overhang steps of a split): no compute at all.
    elif has_overhang:
        @pl.when(g < num_tiles)
        def _():
            accumulate(None)
    else:
        accumulate(None)


def combined_dice_bce_loss(logits, targets, weight_bce=0.5, weight_dice=0.5,
                           *, tile_rows=TILE_ROWS, num_splits=None):
    # TODO(synk): pos_weight branch of BCEWithLogitsLoss not wired in (module
    # default pos_weight=None is what we implement).
    assert logits.shape == targets.shape
    assert tile_rows % SUBLANES == 0
    n_valid = int(logits.size)
    assert n_valid > 0

    x = logits.reshape(-1)
    y = targets.reshape(-1)
    chunk = SUBLANES * LANES
    pad = (-n_valid) % chunk
    if pad:
        # Rare: pad only up to the next full (8,128) tile (masked in-kernel).
        x = jnp.pad(x, (0, pad))
        y = jnp.pad(y, (0, pad))
    rows = (n_valid + pad) // LANES
    x = x.reshape(rows, LANES)
    y = y.reshape(rows, LANES)

    tile_rows = min(rows, tile_rows)
    tile_elems = tile_rows * LANES
    num_tiles = pl.cdiv(rows, tile_rows)

    if num_splits is None:
        num_splits = _default_num_splits()
    splits = num_splits if num_tiles >= num_splits else 1
    tiles_per_split = pl.cdiv(num_tiles, splits)

    has_ragged = n_valid != num_tiles * tile_elems
    has_overhang = splits * tiles_per_split > num_tiles

    def in_index_map(c, t):
        g = c * tiles_per_split + t
        # Clamp overhang steps of a split onto the last real tile; their DMA is
        # deduped by Pallas and their compute is gated off inside the kernel.
        return (jnp.minimum(g, num_tiles - 1), 0)

    kernel = functools.partial(
        _partial_sums_kernel,
        n_valid=n_valid, num_tiles=num_tiles, tiles_per_split=tiles_per_split,
        tile_elems=tile_elems, has_ragged=has_ragged, has_overhang=has_overhang)

    in_bytes = int(x.size * x.dtype.itemsize + y.size * y.dtype.itemsize)
    out_bytes = int(splits * 3 * SUBLANES * LANES * 4)
    cost = pl.CostEstimate(flops=16 * n_valid,
                           transcendentals=3 * n_valid,
                           bytes_accessed=in_bytes + out_bytes)

    partials = pl.pallas_call(
        kernel,
        out_shape=jax.ShapeDtypeStruct((splits, 3, SUBLANES, LANES), jnp.float32),
        grid_spec=pltpu.PrefetchScalarGridSpec(
            num_scalar_prefetch=0,
            grid=(splits, tiles_per_split),
            in_specs=[
                pl.BlockSpec((tile_rows, LANES), in_index_map),
                pl.BlockSpec((tile_rows, LANES), in_index_map),
            ],
            out_specs=pl.BlockSpec((1, 3, SUBLANES, LANES),
                                   lambda c, t: (c, 0, 0, 0)),
        ),
        compiler_params=pltpu.CompilerParams(
            dimension_semantics=("parallel", "arbitrary")),
        cost_estimate=cost,
    )(x, y)

    # Tiny epilogue: cross-lane/sublane/split combine + final loss math.
    sums = jnp.sum(partials, axis=(0, 2, 3))          # (3,) = [bce, inter, probs+y]
    bce_loss = sums[0] / jnp.float32(n_valid)
    dice_loss = 1.0 - (2.0 * sums[1] + SMOOTH) / (sums[2] + SMOOTH)
    return weight_bce * bce_loss + weight_dice * dice_loss


def _reference_loss(logits, targets, weight_bce=0.5, weight_dice=0.5):
    x = logits.astype(jnp.float32)
    y = targets.astype(jnp.float32)
    bce = jnp.mean(jnp.maximum(x, 0.0) - x * y + jnp.log1p(jnp.exp(-jnp.abs(x))))
    probs = jax.nn.sigmoid(x)
    smooth = 1e-06
    intersection = jnp.sum(probs * y)
    dice = 1.0 - (2.0 * intersection + smooth) / (jnp.sum(probs) + jnp.sum(y) + smooth)
    return weight_bce * bce + weight_dice * dice


if __name__ == "__main__":
    key = jax.random.PRNGKey(0)

    # (shape, kwargs) — small cases that still exercise the single-tile,
    # ragged-tail, multi-tile, parallel-split and overhang-tile code paths
    # (tile_rows/num_splits overrides keep the shapes tiny).
    cases = [
        ((2, 4, 16, 16), {}),                                  # single tile, exact fit
        ((2, 3, 17, 19), {}),                                  # numel % 1024 != 0 -> masked tail
        ((2, 4, 64, 64), dict(tile_rows=64, num_splits=2)),    # 4 tiles, 2-way split
        ((2, 4, 80, 63), dict(tile_rows=64, num_splits=2)),    # 5 tiles, overhang + ragged tail
    ]

    for shape, kwargs in cases:
        key, k1, k2 = jax.random.split(key, 3)
        logits = jax.random.normal(k1, shape, dtype=jnp.float32) * 2.0
        targets = (jax.random.uniform(k2, shape) > 0.5).astype(jnp.float32)

        loss = jax.block_until_ready(combined_dice_bce_loss(logits, targets, **kwargs))
        ref = jax.block_until_ready(_reference_loss(logits, targets))
        assert abs(float(loss) - float(ref)) < 5e-5, (shape, float(loss), float(ref))

    print("KERNEL_OK")
</pallas_src>

<mosaic_0001>
module attributes {stable_mosaic.version = 11 : i64} {
  func.func @_partial_sums_kernel(%arg0: i32, %arg1: i32, %arg2: memref<16x128xf32, #tpu.memory_space<vmem>>, %arg3: memref<16x128xf32, #tpu.memory_space<vmem>>, %arg4: memref<1x3x8x128xf32, #tpu.memory_space<vmem>>) attributes {dimension_semantics = [#tpu.dimension_semantics<parallel>, #tpu.dimension_semantics<arbitrary>], iteration_bounds = array<i64: 1, 1>, scalar_prefetch = 0 : i64, scratch_operands = 0 : i64, tpu.core_type = #tpu.core_type<tc>, window_params = [{transform_indices = @transform_0, window_bounds = array<i64: 16, 128>}, {transform_indices = @transform_1, window_bounds = array<i64: 16, 128>}, {transform_indices = @transform_2, window_bounds = array<i64: 1, 3, 8, 128>}]} {
    %c0_i32 = arith.constant 0 : i32
    %0 = arith.cmpi eq, %arg1, %c0_i32 : i32
    %1 = arith.extui %0 : i1 to i32
    %c0_i32_0 = arith.constant 0 : i32
    %2 = arith.cmpi ne, %1, %c0_i32_0 : i32
    scf.if %2 {
      %cst_33 = arith.constant 0.000000e+00 : f32
      %49 = vector.broadcast %cst_33 : f32 to vector<1x3x8x128xf32>
      %c0_34 = arith.constant 0 : index
      %c0_35 = arith.constant 0 : index
      %c0_36 = arith.constant 0 : index
      %c0_37 = arith.constant 0 : index
      %50 = vector.load %arg4[%c0_34, %c0_35, %c0_36, %c0_37] : memref<1x3x8x128xf32, #tpu.memory_space<vmem>>, vector<1x3x8x128xf32>
      tpu.vector_store %arg4[%c0_34, %c0_35, %c0_36, %c0_37], %49 {strides = array<i32>} : memref<1x3x8x128xf32, #tpu.memory_space<vmem>>, vector<1x3x8x128xf32>,
    } else {
    }
    %c0 = arith.constant 0 : index
    %c0_1 = arith.constant 0 : index
    %3 = vector.load %arg2[%c0, %c0_1] : memref<16x128xf32, #tpu.memory_space<vmem>>, vector<16x128xf32>
    %c0_2 = arith.constant 0 : index
    %c0_3 = arith.constant 0 : index
    %4 = vector.load %arg3[%c0_2, %c0_3] : memref<16x128xf32, #tpu.memory_space<vmem>>, vector<16x128xf32>
    %5 = math.absf %3 : vector<16x128xf32>
    %cst = arith.constant 0.000000e+00 : f32
    %6 = vector.broadcast %cst : f32 to vector<16x128xf32>
    %7 = arith.subf %6, %5 : vector<16x128xf32>
    %8 = math.exp %7 : vector<16x128xf32>
    %cst_4 = arith.constant 0.000000e+00 : f32
    %9 = vector.broadcast %cst_4 : f32 to vector<16x128xf32>
    %10 = arith.maximumf %3, %9 : vector<16x128xf32>
    %11 = arith.mulf %3, %4 : vector<16x128xf32>
    %12 = arith.subf %10, %11 : vector<16x128xf32>
    %13 = math.log1p %8 : vector<16x128xf32>
    %14 = arith.addf %12, %13 : vector<16x128xf32>
    %cst_5 = arith.constant 1.000000e+00 : f32
    %15 = vector.broadcast %cst_5 : f32 to vector<16x128xf32>
    %16 = arith.addf %15, %8 : vector<16x128xf32>
    %cst_6 = arith.constant 1.000000e+00 : f32
    %17 = vector.broadcast %cst_6 : f32 to vector<16x128xf32>
    %18 = arith.divf %17, %16 : vector<16x128xf32>
    %cst_7 = arith.constant 0.000000e+00 : f32
    %19 = vector.broadcast %cst_7 : f32 to vector<16x128xf32>
    %20 = arith.cmpf oge, %3, %19 : vector<16x128xf32>
    %21 = arith.mulf %8, %18 : vector<16x128xf32>
    %22 = arith.select %20, %18, %21 : vector<16x128xi1>, vector<16x128xf32>
    %23 = arith.mulf %22, %4 : vector<16x128xf32>
    %24 = arith.addf %22, %4 : vector<16x128xf32>
    %25 = vector.shape_cast %14 : vector<16x128xf32> to vector<2x8x128xf32>
    %cst_8 = arith.constant dense<0.000000e+00> : vector<8x128xf32>
    %26 = vector.multi_reduction <add>, %25, %cst_8 [0] : vector<2x8x128xf32> to vector<8x128xf32>
    %27 = vector.shape_cast %23 : vector<16x128xf32> to vector<2x8x128xf32>
    %cst_9 = arith.constant dense<0.000000e+00> : vector<8x128xf32>
    %28 = vector.multi_reduction <add>, %27, %cst_9 [0] : vector<2x8x128xf32> to vector<8x128xf32>
    %29 = vector.shape_cast %24 : vector<16x128xf32> to vector<2x8x128xf32>
    %cst_10 = arith.constant dense<0.000000e+00> : vector<8x128xf32>
    %30 = vector.multi_reduction <add>, %29, %cst_10 [0] : vector<2x8x128xf32> to vector<8x128xf32>
    %c0_11 = arith.constant 0 : index
    %c0_12 = arith.constant 0 : index
    %c0_13 = arith.constant 0 : index
    %c0_14 = arith.constant 0 : index
    %31 = vector.load %arg4[%c0_11, %c0_12, %c0_13, %c0_14] : memref<1x3x8x128xf32, #tpu.memory_space<vmem>>, vector<1x1x8x128xf32>
    %32 = vector.shape_cast %31 : vector<1x1x8x128xf32> to vector<8x128xf32>
    %33 = arith.addf %32, %26 : vector<8x128xf32>
    %c0_15 = arith.constant 0 : index
    %c0_16 = arith.constant 0 : index
    %c0_17 = arith.constant 0 : index
    %c0_18 = arith.constant 0 : index
    %34 = vector.load %arg4[%c0_15, %c0_16, %c0_17, %c0_18] : memref<1x3x8x128xf32, #tpu.memory_space<vmem>>, vector<1x1x8x128xf32>
    %35 = vector.shape_cast %34 : vector<1x1x8x128xf32> to vector<8x128xf32>
    %36 = vector.shape_cast %33 : vector<8x128xf32> to vector<1x1x8x128xf32>
    tpu.vector_store %arg4[%c0_15, %c0_16, %c0_17, %c0_18], %36 {strides = array<i32>} : memref<1x3x8x128xf32, #tpu.memory_space<vmem>>, vector<1x1x8x128xf32>,
    %c0_19 = arith.constant 0 : index
    %c1 = arith.constant 1 : index
    %c0_20 = arith.constant 0 : index
    %c0_21 = arith.constant 0 : index
    %37 = vector.load %arg4[%c0_19, %c1, %c0_20, %c0_21] : memref<1x3x8x128xf32, #tpu.memory_space<vmem>>, vector<1x1x8x128xf32>
    %38 = vector.shape_cast %37 : vector<1x1x8x128xf32> to vector<8x128xf32>
    %39 = arith.addf %38, %28 : vector<8x128xf32>
    %c0_22 = arith.constant 0 : index
    %c1_23 = arith.constant 1 : index
    %c0_24 = arith.constant 0 : index
    %c0_25 = arith.constant 0 : index
    %40 = vector.load %arg4[%c0_22, %c1_23, %c0_24, %c0_25] : memref<1x3x8x128xf32, #tpu.memory_space<vmem>>, vector<1x1x8x128xf32>
    %41 = vector.shape_cast %40 : vector<1x1x8x128xf32> to vector<8x128xf32>
    %42 = vector.shape_cast %39 : vector<8x128xf32> to vector<1x1x8x128xf32>
    tpu.vector_store %arg4[%c0_22, %c1_23, %c0_24, %c0_25], %42 {strides = array<i32>} : memref<1x3x8x128xf32, #tpu.memory_space<vmem>>, vector<1x1x8x128xf32>,
    %c0_26 = arith.constant 0 : index
    %c2 = arith.constant 2 : index
    %c0_27 = arith.constant 0 : index
    %c0_28 = arith.constant 0 : index
    %43 = vector.load %arg4[%c0_26, %c2, %c0_27, %c0_28] : memref<1x3x8x128xf32, #tpu.memory_space<vmem>>, vector<1x1x8x128xf32>
    %44 = vector.shape_cast %43 : vector<1x1x8x128xf32> to vector<8x128xf32>
    %45 = arith.addf %44, %30 : vector<8x128xf32>
    %c0_29 = arith.constant 0 : index
    %c2_30 = arith.constant 2 : index
    %c0_31 = arith.constant 0 : index
    %c0_32 = arith.constant 0 : index
    %46 = vector.load %arg4[%c0_29, %c2_30, %c0_31, %c0_32] : memref<1x3x8x128xf32, #tpu.memory_space<vmem>>, vector<1x1x8x128xf32>
    %47 = vector.shape_cast %46 : vector<1x1x8x128xf32> to vector<8x128xf32>
    %48 = vector.shape_cast %45 : vector<8x128xf32> to vector<1x1x8x128xf32>
    tpu.vector_store %arg4[%c0_29, %c2_30, %c0_31, %c0_32], %48 {strides = array<i32>} : memref<1x3x8x128xf32, #tpu.memory_space<vmem>>, vector<1x1x8x128xf32>,
    return
  }
  func.func @transform_0(%arg0: i32, %arg1: i32) -> (i32, i32) {
    %c1_i32 = arith.constant 1 : i32
    %0 = arith.muli %arg0, %c1_i32 : i32
    %1 = arith.addi %0, %arg1 : i32
    %c0_i32 = arith.constant 0 : i32
    %2 = arith.minsi %1, %c0_i32 : i32
    %c0_i32_0 = arith.constant 0 : i32
    %c0_i32_1 = arith.constant 0 : i32
    return %2, %c0_i32_0 : i32, i32
  }
  func.func @transform_1(%arg0: i32, %arg1: i32) -> (i32, i32) {
    %c1_i32 = arith.constant 1 : i32
    %0 = arith.muli %arg0, %c1_i32 : i32
    %1 = arith.addi %0, %arg1 : i32
    %c0_i32 = arith.constant 0 : i32
    %2 = arith.minsi %1, %c0_i32 : i32
    %c0_i32_0 = arith.constant 0 : i32
    %c0_i32_1 = arith.constant 0 : i32
    return %2, %c0_i32_0 : i32, i32
  }
  func.func @transform_2(%arg0: i32, %arg1: i32) -> (i32, i32, i32, i32) {
    %c0_i32 = arith.constant 0 : i32
    %c0_i32_0 = arith.constant 0 : i32
    %c0_i32_1 = arith.constant 0 : i32
    %c0_i32_2 = arith.constant 0 : i32
    return %arg0, %c0_i32, %c0_i32_0, %c0_i32_1 : i32, i32, i32, i32
  }
}

</mosaic_0001>

<bundles_post_ra>
// kernel: tpu_custom_call.1
= control target key start
LH: loop header
LB: loop body
LE: loop exit
PB: predicated region body
PF: predicated region fallthrough
CT: control target
= control target key end

     0   :  { %7 = vsyncpa [#allocation3], 0  ;;  %s360_s0 = inlined_call_operand.hbm [shape: f32[16,128], index: 0, kind: input, shape index: {}]   ;;  %s361_s1 = inlined_call_operand.hbm [shape: f32[16,128], index: 1, kind: input, shape index: {}]   ;;  %s362_s2 = inlined_call_operand.hbm [shape: f32[1,3,8,128], index: 2, kind: output, shape index: {}]  }
   0x1   :  { %8 = vsyncpa [#allocation6], 0 }
   0x2   :  { %9 = vsyncpa [#allocation4], 0  ;;  %s20_s11 = sshll.u32 %s360_s0, 4  ;;  %s285_s12 = smov [#allocation2]   ;;  %s21_s11 = int_to_ptr.hbm [resolvable:$true] %s20_s11 }
   0x3   :  { %s22_s13 = sshll.u32 %s285_s12, 4  ;;  %s39_s16 = sshll.u32 %s361_s1, 4  ;;  %s23_s13 = int_to_ptr.vmem [resolvable:$true] %s22_s13  ;;  %s40_s16 = int_to_ptr.hbm [resolvable:$true] %s39_s16 }
   0x4   :  { %s286_s17 = smov 128   ;;  %s287_s18 = smov 8  }
   0x5   :  { %28 = dma.hbm_to_vmem [thread:$0]  %s21_s11, 256, %s23_s13, [#allocation3], %s286_s17, %s286_s17, %s287_s18  }
   0x6   :  { %s288_s19 = smov [#allocation5]  }
   0x7   :  { %s41_s20 = sshll.u32 %s288_s19, 4  ;;  %s42_s20 = int_to_ptr.vmem [resolvable:$true] %s41_s20 }
   0x8   :  { %47 = dma.hbm_to_vmem [thread:$0]  %s40_s16, 256, %s42_s20, [#allocation6], %s286_s17, %s286_s17, %s287_s18  }
   0x9   :  { %279 = dma.done.wait [#allocation3], 256  }
   0xa   :  { %280 = vsyncadd [#allocation3], 4294967040 }
   0xb   :  { %281 = dma.done.wait [#allocation6], 256  }
   0xc   :  { %282 = vsyncadd [#allocation6], 4294967040  ;;  %v317_v0 = vld [vmem:[#allocation2] sm:$0xff]  ;;  %v319_v1 = vld [vmem:[#allocation2 + $0x8] sm:$0xff]  ;;  %s289_s0 = smov [#allocation7]   ;;  %s171_s23 = sshll.u32 %s362_s2, 4  ;;  %s172_s23 = int_to_ptr.hbm [resolvable:$true] %s171_s23 }
   0xd   :  { %v75_v2 = vand.u32 2147483647, %v317_v0  ;;  %v76_v3 = vand.u32 2147483647, %v319_v1  ;;  %v329_v12 = vld [vmem:[#allocation5] sm:$0xff]  ;;  %v333_v15 = vld [vmem:[#allocation5 + $0x8] sm:$0xff] }
   0xe   :  { %v83_v16 = vmax.f32 %v317_v0, 0.0  ;;  %v85_v18 = vmul.f32 %v329_v12, %v317_v0  ;;  %v84_v21 = vmax.f32 %v319_v1, 0.0  ;;  %v86_v22 = vmul.f32 %v333_v15, %v319_v1  ;;  %s169_s1 = sshll.u32 %s289_s0, 4  ;;  %s170_s1 = int_to_ptr.vmem [resolvable:$true] %s169_s1 }
   0xf   :  { %v77_v4 = vsub.f32 0.0, %v75_v2  ;;  %v78_v5 = vsub.f32 0.0, %v76_v3  ;;  %vm141_vm10 = vcmp.ge.f32.partialorder %v317_v0, 0.0  ;;  %vm142_vm11 = vcmp.ge.f32.partialorder %v319_v1, 0.0 }
  0x10   :  { %v87_v26 = vsub.f32 %v83_v16, %v85_v18  ;;  %v88_v29 = vsub.f32 %v84_v21, %v86_v22 }
  0x11   :  { %v79_v6 = vmul.f32 1.442695, %v77_v4  ;;  %v81_v7 = vmul.f32 1.442695, %v78_v5 }
  0x13   :  { %195 = vpow2.f32 %v79_v6 }
  0x14   :  { %197 = vpow2.f32 %v81_v7 }
  0x19   :  { %v323_v8 = vpop.eup %195 }
  0x1a   :  { %v325_v9 = vpop.eup %197  ;;  %v89_v10 = vadd.f32 1.0, %v323_v8  ;;  %v92_v11 = vmul.f32 -0.5, %v323_v8  ;;  %v95_v19 = vand.u32 2147483647, %v323_v8 }
  0x1b   :  { %v98_v13 = vadd.f32 1.0, %v325_v9  ;;  %v101_v14 = vmul.f32 -0.5, %v325_v9  ;;  %v104_v23 = vand.u32 2147483647, %v325_v9 }
  0x1c   :  { %199 = vlog2.f32 %v89_v10  ;;  %v93_v17 = vadd.f32 1.0, %v92_v11  ;;  %vm96_vm0 = vcmp.lt.f32.partialorder %v95_v19, 0.0004427343  ;;  %vm116_vm2 = vweird.f32 %v89_v10 }
  0x1d   :  { %201 = vlog2.f32 %v98_v13  ;;  %v102_v20 = vadd.f32 1.0, %v101_v14  ;;  %vm105_vm1 = vcmp.lt.f32.partialorder %v104_v23, 0.0004427343  ;;  %v120_v36 = vand.u32 2147483647, %v89_v10 }
  0x1e   :  { %203 = vrcp.f32 %v89_v10  ;;  %v94_v24 = vmul.f32 %v323_v8, %v93_v17  ;;  %v122_v39 = vand.u32 2147483648, %v89_v10  ;;  %v137_v43 = vand.u32 2147483648, %v98_v13 }
  0x1f   :  { %205 = vrcp.f32 %v98_v13  ;;  %v103_v27 = vmul.f32 %v325_v9, %v102_v20  ;;  %vm131_vm4 = vweird.f32 %v98_v13  ;;  %v135_v45 = vand.u32 2147483647, %v98_v13 }
  0x20   :  { %v123_v48 = vor.u32 1.1754944e-38, %v122_v39  ;;  %vm121_vm7 = vcmp.eq.f32.partialorder %v120_v36, 8.507059e+37  ;;  %v138_v51 = vor.u32 1.1754944e-38, %v137_v43 }
  0x21   :  { %vm136_vm9 = vcmp.eq.f32.partialorder %v135_v45, 8.507059e+37 }
  0x22   :  { %v200_v25 = vpop.eup %199 }
  0x23   :  { %v202_v28 = vpop.eup %201  ;;  %v91_v30 = vmul.f32 0.6931472, %v200_v25 }
  0x24   :  { %v204_v31 = vpop.eup %203  ;;  %v100_v32 = vmul.f32 0.6931472, %v202_v28 }
  0x25   :  { %v206_v33 = vpop.eup %205  ;;  %v97_v34 = vsel %vm96_vm0, %v94_v24, %v91_v30  ;;  %v112_v35 = vmul.f32 %v204_v31, %v89_v10  ;;  %vm117_vm3 = vweird.f32 %v204_v31 }
  0x26   :  { %v106_v37 = vsel %vm105_vm1, %v103_v27, %v100_v32  ;;  %v107_v38 = vadd.f32 %v97_v34, %v87_v26  ;;  %v127_v40 = vmul.f32 %v206_v33, %v98_v13  ;;  %vm132_vm5 = vweird.f32 %v206_v33  ;;  %vm118_vm6 = vmor %vm116_vm2, %vm117_vm3 }
  0x27   :  { %v108_v41 = vadd.f32 %v106_v37, %v88_v29  ;;  %v113_v42 = vsub.f32 1.0, %v112_v35  ;;  %vm133_vm8 = vmor %vm131_vm4, %vm132_vm5 }
  0x28   :  { %v128_v44 = vsub.f32 1.0, %v127_v40 }
  0x29   :  { %v151_v46 = vadd.f32 %v108_v41, %v107_v38  ;;  %v114_v47 = vmul.f32 %v204_v31, %v113_v42 }
  0x2a   :  { %v129_v49 = vmul.f32 %v206_v33, %v128_v44 }
  0x2b   :  { %v115_v50 = vadd.f32 %v204_v31, %v114_v47  ;;  %156 = vst [vmem:[#allocation7] sm:$0xff] %v151_v46 }
  0x2c   :  { %v130_v52 = vadd.f32 %v206_v33, %v129_v49 }
  0x2d   :  { %v119_v53 = vsel %vm118_vm6, %v204_v31, %v115_v50 }
  0x2e   :  { %v124_v54 = vsel %vm121_vm7, %v123_v48, %v119_v53  ;;  %v134_v55 = vsel %vm133_vm8, %v206_v33, %v130_v52 }
  0x2f   :  { %v139_v56 = vsel %vm136_vm9, %v138_v51, %v134_v55  ;;  %v143_v57 = vmul.f32 %v323_v8, %v124_v54 }
  0x30   :  { %v144_v58 = vmul.f32 %v325_v9, %v139_v56 }
  0x31   :  { %v145_v59 = vsel %vm141_vm10, %v124_v54, %v143_v57 }
  0x32   :  { %v146_v60 = vsel %vm142_vm11, %v139_v56, %v144_v58  ;;  %v147_v61 = vmul.f32 %v145_v59, %v329_v12  ;;  %v149_v62 = vadd.f32 %v145_v59, %v329_v12 }
  0x33   :  { %v148_v63 = vmul.f32 %v146_v60, %v333_v15  ;;  %v150_v2 = vadd.f32 %v146_v60, %v333_v15 }
  0x35   :  { %v152_v3 = vadd.f32 %v148_v63, %v147_v61  ;;  %v153_v4 = vadd.f32 %v150_v2, %v149_v62 }
  0x37   :  { %160 = vst [vmem:[#allocation7 + $0x8] sm:$0xff] %v152_v3 }
  0x38   :  { %164 = vst [vmem:[#allocation7 + $0x10] sm:$0xff] %v153_v4 }
  0x39   :  { %177 = dma.vmem_to_hbm [thread:$0]  %s170_s1, 384, %s172_s23, [#allocation4], %s286_s17, %s286_s17, %s287_s18  }
  0x3a   :  { %283 = dma.done.wait [#allocation4], 384  }
  0x3b   :  { %284 = vsyncadd [#allocation4], 4294966912 }
  0x3c   :  { %182 = vsyncpa [#allocation3], 1 }
  0x3d   :  { %183 = vsyncpa [#allocation6], 1 }
  0x3e   :  { %184 = vsyncpa [#allocation4], 1 }

</bundles_post_ra>
